<compile_context>
chip_gen: v7x
topology: tpu7x:2x2x1
jax: 0.10.0
libtpu: 0.0.40
codegen_flags: <defaults>
</compile_context>

<pallas_src>
import math
import jax
import jax.numpy as jnp
from jax.experimental import pallas as pl
from jax.experimental.pallas import tpu as pltpu

# ----- model config (small, deterministic) -----
B = 2          # batch
S = 8          # sequence length
H = 32         # hidden size
NH = 4         # num attention heads
HD = H // NH   # head dim
EPS = 1e-12


def _tensorcores_per_chip():
    """2 TensorCores per chip on v7x, 1 on v5e/v6e (default to 1)."""
    try:
        kind = jax.devices()[0].device_kind.lower()
    except Exception:
        return 1
    return 2 if "v7" in kind else 1


def self_attention_kernel(
    x_ref,       # (BB, S, H)    input rows for this grid step
    fm_ref,      # (1, BB*S, BB*S) fused additive mask (key mask + cross-batch)
    wqkv_ref,    # (H, 3H)       [Wq*scale | Wk | Wv]
    bqkv_ref,    # (1, 3H)       [bq*scale | bk | bv]
    wo_ref, bo_ref,        # (H, H), (1, H)
    gamma_ref, beta_ref,   # (1, H), (1, H)  LayerNorm params
    o_ref,       # (BB, S*H)     lane-dense output slab
):
    BB = x_ref.shape[0]
    M = BB * S

    # (BB, S, H) -> (BB*S, H): free collapse (S == 8 == sublane tile).
    x2 = x_ref[...].reshape(M, H)
    fm = fm_ref[0]                                    # (M, M)

    # --- fused QKV projection: single MXU push (scale folded into Wq/bq) ---
    qkv = jnp.dot(x2, wqkv_ref[...],
                  preferred_element_type=jnp.float32) + bqkv_ref[...]   # (M, 3H)

    def head_stack(base):
        # Cheap static lane slices; heads stacked on a leading (untiled) axis.
        pieces = [qkv[:, base + h * HD: base + (h + 1) * HD] for h in range(NH)]
        return jnp.stack(pieces, axis=0)              # (NH, M, HD)

    q = head_stack(0)
    k = head_stack(H)
    v = head_stack(2 * H)

    # --- all heads in one batched contraction (no per-head loop, no k.T) ---
    scores = jnp.einsum("hmd,hnd->hmn", q, k,
                        preferred_element_type=jnp.float32)             # (NH, M, M)
    scores = scores + fm                              # broadcast over heads

    # softmax over keys
    row_max = jnp.max(scores, axis=-1, keepdims=True)
    p = jnp.exp(scores - row_max)
    denom = jnp.sum(p, axis=-1, keepdims=True)
    probs = p * pl.reciprocal(denom, approx=True)     # EUP vrcp (free slot)

    ctx = jnp.einsum("hmn,hnd->hmd", probs, v,
                     preferred_element_type=jnp.float32)                # (NH, M, HD)

    # heads back onto lanes for the dense projection
    context = jnp.concatenate([ctx[h] for h in range(NH)], axis=-1)     # (M, H)

    # --- output projection + residual ---
    hidden = jnp.dot(context, wo_ref[...],
                     preferred_element_type=jnp.float32) + bo_ref[...]
    hidden = hidden + x2

    # --- LayerNorm (TF-style: eps inside sqrt, biased variance) ---
    u = jnp.mean(hidden, axis=-1, keepdims=True)
    d = hidden - u
    var = jnp.mean(d * d, axis=-1, keepdims=True)
    out = gamma_ref[...] * (d * jax.lax.rsqrt(var + EPS)) + beta_ref[...]   # (M, H)

    # --- lane-dense output slab: (M, H) -> (BB, S*H) so the last dim is a
    #     multiple of 128 lanes (unmasked stores, dense writeback) ---
    out3 = out.reshape(BB, S, H)
    flat = jnp.concatenate([out3[:, s, :] for s in range(S)], axis=-1)  # (BB, S*H)
    o_ref[...] = flat.astype(o_ref.dtype)


def self_attention(x, attn_mask, params, batch_block=None):
    """x: (B,S,H) f32; attn_mask: (B,S) f32 additive mask over keys."""
    wq, bq, wk, bk, wv, bv, wo, bo, gamma, beta = params

    if batch_block is None:
        # v7x: one batch element per TensorCore (parallel grid of 2).
        # v5e/v6e (single TC): fuse the whole batch into one grid step.
        batch_block = 1 if _tensorcores_per_chip() >= 2 else B
    BB = batch_block
    assert B % BB == 0
    G = B // BB
    M = BB * S

    # --- wrapper-side weight packing (free, plain XLA) ---
    scale = 1.0 / math.sqrt(HD)
    wqkv = jnp.concatenate([wq * scale, wk, wv], axis=1)   # (H, 3H)
    bqkv = jnp.concatenate([bq * scale, bk, bv], axis=1)   # (1, 3H)

    # --- fused additive mask per grid step: key mask (+ cross-batch block) ---
    key_mask = attn_mask.astype(jnp.float32).reshape(G, M)            # (G, M)
    fused_mask = jnp.broadcast_to(key_mask[:, None, :], (G, M, M))
    if BB > 1:
        row_batch = jnp.arange(M) // S
        cross = jnp.where(row_batch[:, None] == row_batch[None, :],
                          0.0, -1e9).astype(jnp.float32)
        fused_mask = fused_mask + cross[None, :, :]

    const2d = lambda g: (0, 0)

    out_flat = pl.pallas_call(
        self_attention_kernel,
        out_shape=jax.ShapeDtypeStruct((B, S * H), jnp.float32),
        grid_spec=pltpu.PrefetchScalarGridSpec(
            num_scalar_prefetch=0,
            grid=(G,),
            in_specs=[
                pl.BlockSpec((BB, S, H), lambda g: (g, 0, 0)),   # x
                pl.BlockSpec((1, M, M), lambda g: (g, 0, 0)),    # fused mask
                pl.BlockSpec((H, 3 * H), const2d),               # wqkv
                pl.BlockSpec((1, 3 * H), const2d),               # bqkv
                pl.BlockSpec((H, H), const2d),                   # wo
                pl.BlockSpec((1, H), const2d),                   # bo
                pl.BlockSpec((1, H), const2d),                   # gamma
                pl.BlockSpec((1, H), const2d),                   # beta
            ],
            out_specs=pl.BlockSpec((BB, S * H), lambda g: (g, 0)),
        ),
        compiler_params=pltpu.CompilerParams(
            dimension_semantics=("parallel",),
        ),
    )(x, fused_mask, wqkv, bqkv, wo, bo, gamma, beta)

    return out_flat.reshape(B, S, H)


def init_params(key):
    ks = jax.random.split(key, 8)
    scale = 0.02
    # weights stored as [H_in, H_out] (already transposed vs torch nn.Linear)
    wq = scale * jax.random.normal(ks[0], (H, H), jnp.float32)
    bq = scale * jax.random.normal(ks[1], (1, H), jnp.float32)
    wk = scale * jax.random.normal(ks[2], (H, H), jnp.float32)
    bk = scale * jax.random.normal(ks[3], (1, H), jnp.float32)
    wv = scale * jax.random.normal(ks[4], (H, H), jnp.float32)
    bv = scale * jax.random.normal(ks[5], (1, H), jnp.float32)
    wo = scale * jax.random.normal(ks[6], (H, H), jnp.float32)
    bo = scale * jax.random.normal(ks[7], (1, H), jnp.float32)
    gamma = jnp.ones((1, H), jnp.float32)
    beta = jnp.zeros((1, H), jnp.float32)
    return (wq, bq, wk, bk, wv, bv, wo, bo, gamma, beta)


def reference(x, attn_mask, params):
    """Plain-JAX reference mirroring the PyTorch forward (eval mode)."""
    wq, bq, wk, bk, wv, bv, wo, bo, gamma, beta = params
    q = x @ wq + bq
    k = x @ wk + bk
    v = x @ wv + bv
    def split(t):  # (B,S,H) -> (B,NH,S,HD)
        return t.reshape(B, S, NH, HD).transpose(0, 2, 1, 3)
    qh, kh, vh = split(q), split(k), split(v)
    scores = jnp.einsum("bhqd,bhkd->bhqk", qh, kh) / math.sqrt(HD)
    scores = scores + attn_mask[:, None, None, :]
    probs = jax.nn.softmax(scores, axis=-1)
    ctx = jnp.einsum("bhqk,bhkd->bhqd", probs, vh)
    ctx = ctx.transpose(0, 2, 1, 3).reshape(B, S, H)
    hidden = ctx @ wo + bo + x
    u = hidden.mean(-1, keepdims=True)
    s = ((hidden - u) ** 2).mean(-1, keepdims=True)
    return gamma * ((hidden - u) / jnp.sqrt(s + EPS)) + beta


if __name__ == "__main__":
    key = jax.random.PRNGKey(0)
    k_x, k_m, k_p = jax.random.split(key, 3)

    x = jax.random.normal(k_x, (B, S, H), jnp.float32)
    # additive mask: 0 for visible keys, -10000 for masked ones
    visible = (jax.random.uniform(k_m, (B, S)) > 0.2).astype(jnp.float32)
    attn_mask = (1.0 - visible) * -10000.0

    params = init_params(k_p)

    out = self_attention(x, attn_mask, params)
    out = jax.block_until_ready(out)

    ref = reference(x, attn_mask, params)
    assert jnp.allclose(out, ref, atol=1e-4, rtol=1e-4), (
        float(jnp.max(jnp.abs(out - ref)))
    )
    print("KERNEL_OK")
</pallas_src>

<mosaic_0001>
module attributes {stable_mosaic.version = 11 : i64} {
  func.func @self_attention_kernel(%arg0: i32, %arg1: memref<2x8x32xf32, #tpu.memory_space<vmem>>, %arg2: memref<1x16x16xf32, #tpu.memory_space<vmem>>, %arg3: memref<32x96xf32, #tpu.memory_space<vmem>>, %arg4: memref<1x96xf32, #tpu.memory_space<vmem>>, %arg5: memref<32x32xf32, #tpu.memory_space<vmem>>, %arg6: memref<1x32xf32, #tpu.memory_space<vmem>>, %arg7: memref<1x32xf32, #tpu.memory_space<vmem>>, %arg8: memref<1x32xf32, #tpu.memory_space<vmem>>, %arg9: memref<2x256xf32, #tpu.memory_space<vmem>>) attributes {dimension_semantics = [#tpu.dimension_semantics<parallel>], iteration_bounds = array<i64: 1>, scalar_prefetch = 0 : i64, scratch_operands = 0 : i64, tpu.core_type = #tpu.core_type<tc>, window_params = [{transform_indices = @transform_0, window_bounds = array<i64: 2, 8, 32>}, {transform_indices = @transform_1, window_bounds = array<i64: 1, 16, 16>}, {pipeline_mode = #tpu.pipeline_mode<synchronous>, transform_indices = @transform_2, window_bounds = array<i64: 32, 96>}, {pipeline_mode = #tpu.pipeline_mode<synchronous>, transform_indices = @transform_3, window_bounds = array<i64: 1, 96>}, {pipeline_mode = #tpu.pipeline_mode<synchronous>, transform_indices = @transform_4, window_bounds = array<i64: 32, 32>}, {pipeline_mode = #tpu.pipeline_mode<synchronous>, transform_indices = @transform_5, window_bounds = array<i64: 1, 32>}, {pipeline_mode = #tpu.pipeline_mode<synchronous>, transform_indices = @transform_6, window_bounds = array<i64: 1, 32>}, {pipeline_mode = #tpu.pipeline_mode<synchronous>, transform_indices = @transform_7, window_bounds = array<i64: 1, 32>}, {transform_indices = @transform_8, window_bounds = array<i64: 2, 256>}]} {
    %c0 = arith.constant 0 : index
    %c0_0 = arith.constant 0 : index
    %c0_1 = arith.constant 0 : index
    %0 = vector.load %arg1[%c0, %c0_0, %c0_1] : memref<2x8x32xf32, #tpu.memory_space<vmem>>, vector<2x8x32xf32>
    %1 = vector.shape_cast %0 : vector<2x8x32xf32> to vector<16x32xf32>
    %c0_2 = arith.constant 0 : index
    %c0_3 = arith.constant 0 : index
    %c0_4 = arith.constant 0 : index
    %2 = vector.load %arg2[%c0_2, %c0_3, %c0_4] : memref<1x16x16xf32, #tpu.memory_space<vmem>>, vector<1x16x16xf32>
    %3 = vector.shape_cast %2 : vector<1x16x16xf32> to vector<16x16xf32>
    %c0_5 = arith.constant 0 : index
    %c0_6 = arith.constant 0 : index
    %4 = vector.load %arg3[%c0_5, %c0_6] : memref<32x96xf32, #tpu.memory_space<vmem>>, vector<32x96xf32>
    %cst = arith.constant dense<0.000000e+00> : vector<16x96xf32>
    %5 = tpu.matmul %1, %4, %cst {dimension_numbers = #tpu.dot_dimension_numbers<[1], [0], [0], [1], [0, 0, 1, 1], [], []>} : vector<16x32xf32>, vector<32x96xf32>, vector<16x96xf32> -> vector<16x96xf32>
    %c0_7 = arith.constant 0 : index
    %c0_8 = arith.constant 0 : index
    %6 = vector.load %arg4[%c0_7, %c0_8] : memref<1x96xf32, #tpu.memory_space<vmem>>, vector<1x96xf32>
    %7 = vector.broadcast %6 : vector<1x96xf32> to vector<16x96xf32>
    %8 = arith.addf %5, %7 : vector<16x96xf32>
    %9 = vector.extract_strided_slice %8 {offsets = [0, 0], sizes = [16, 8], strides = [1, 1]} : vector<16x96xf32> to vector<16x8xf32>
    %10 = vector.extract_strided_slice %8 {offsets = [0, 8], sizes = [16, 8], strides = [1, 1]} : vector<16x96xf32> to vector<16x8xf32>
    %11 = vector.extract_strided_slice %8 {offsets = [0, 16], sizes = [16, 8], strides = [1, 1]} : vector<16x96xf32> to vector<16x8xf32>
    %12 = vector.extract_strided_slice %8 {offsets = [0, 24], sizes = [16, 8], strides = [1, 1]} : vector<16x96xf32> to vector<16x8xf32>
    %13 = vector.shape_cast %9 : vector<16x8xf32> to vector<1x16x8xf32>
    %14 = vector.shape_cast %10 : vector<16x8xf32> to vector<1x16x8xf32>
    %15 = vector.shape_cast %11 : vector<16x8xf32> to vector<1x16x8xf32>
    %16 = vector.shape_cast %12 : vector<16x8xf32> to vector<1x16x8xf32>
    %17 = tpu.concatenate %13, %14, %15, %16 in 0 : vector<1x16x8xf32>, vector<1x16x8xf32>, vector<1x16x8xf32>, vector<1x16x8xf32> -> vector<4x16x8xf32>
    %18 = vector.extract_strided_slice %8 {offsets = [0, 32], sizes = [16, 8], strides = [1, 1]} : vector<16x96xf32> to vector<16x8xf32>
    %19 = vector.extract_strided_slice %8 {offsets = [0, 40], sizes = [16, 8], strides = [1, 1]} : vector<16x96xf32> to vector<16x8xf32>
    %20 = vector.extract_strided_slice %8 {offsets = [0, 48], sizes = [16, 8], strides = [1, 1]} : vector<16x96xf32> to vector<16x8xf32>
    %21 = vector.extract_strided_slice %8 {offsets = [0, 56], sizes = [16, 8], strides = [1, 1]} : vector<16x96xf32> to vector<16x8xf32>
    %22 = vector.shape_cast %18 : vector<16x8xf32> to vector<1x16x8xf32>
    %23 = vector.shape_cast %19 : vector<16x8xf32> to vector<1x16x8xf32>
    %24 = vector.shape_cast %20 : vector<16x8xf32> to vector<1x16x8xf32>
    %25 = vector.shape_cast %21 : vector<16x8xf32> to vector<1x16x8xf32>
    %26 = tpu.concatenate %22, %23, %24, %25 in 0 : vector<1x16x8xf32>, vector<1x16x8xf32>, vector<1x16x8xf32>, vector<1x16x8xf32> -> vector<4x16x8xf32>
    %27 = vector.extract_strided_slice %8 {offsets = [0, 64], sizes = [16, 8], strides = [1, 1]} : vector<16x96xf32> to vector<16x8xf32>
    %28 = vector.extract_strided_slice %8 {offsets = [0, 72], sizes = [16, 8], strides = [1, 1]} : vector<16x96xf32> to vector<16x8xf32>
    %29 = vector.extract_strided_slice %8 {offsets = [0, 80], sizes = [16, 8], strides = [1, 1]} : vector<16x96xf32> to vector<16x8xf32>
    %30 = vector.extract_strided_slice %8 {offsets = [0, 88], sizes = [16, 8], strides = [1, 1]} : vector<16x96xf32> to vector<16x8xf32>
    %31 = vector.shape_cast %27 : vector<16x8xf32> to vector<1x16x8xf32>
    %32 = vector.shape_cast %28 : vector<16x8xf32> to vector<1x16x8xf32>
    %33 = vector.shape_cast %29 : vector<16x8xf32> to vector<1x16x8xf32>
    %34 = vector.shape_cast %30 : vector<16x8xf32> to vector<1x16x8xf32>
    %35 = tpu.concatenate %31, %32, %33, %34 in 0 : vector<1x16x8xf32>, vector<1x16x8xf32>, vector<1x16x8xf32>, vector<1x16x8xf32> -> vector<4x16x8xf32>
    "tpu.trace_start"() <{level = 10 : i32, message = "hmd,hnd->hmn"}> : () -> ()
    %cst_9 = arith.constant dense<0.000000e+00> : vector<4x16x16xf32>
    %36 = tpu.matmul %17, %26, %cst_9 {dimension_numbers = #tpu.dot_dimension_numbers<[2], [2], [1], [1], [0, 0, 0, 1, 1, 1], [0], [0]>} : vector<4x16x8xf32>, vector<4x16x8xf32>, vector<4x16x16xf32> -> vector<4x16x16xf32>
    "tpu.trace_stop"() : () -> ()
    %37 = vector.shape_cast %3 : vector<16x16xf32> to vector<1x16x16xf32>
    %38 = vector.broadcast %37 : vector<1x16x16xf32> to vector<4x16x16xf32>
    %39 = arith.addf %36, %38 : vector<4x16x16xf32>
    %cst_10 = arith.constant dense<0xFF800000> : vector<4x16xf32>
    %40 = vector.multi_reduction <maximumf>, %39, %cst_10 [2] : vector<4x16x16xf32> to vector<4x16xf32>
    %41 = vector.shape_cast %40 : vector<4x16xf32> to vector<4x16x1xf32>
    %42 = vector.broadcast %41 : vector<4x16x1xf32> to vector<4x16x16xf32>
    %43 = arith.subf %39, %42 : vector<4x16x16xf32>
    %44 = math.exp %43 : vector<4x16x16xf32>
    %cst_11 = arith.constant dense<0.000000e+00> : vector<4x16xf32>
    %45 = vector.multi_reduction <add>, %44, %cst_11 [2] : vector<4x16x16xf32> to vector<4x16xf32>
    %46 = vector.shape_cast %45 : vector<4x16xf32> to vector<4x16x1xf32>
    %47 = tpu.reciprocal %46 {approx = true} : vector<4x16x1xf32> -> vector<4x16x1xf32>
    %48 = vector.broadcast %47 : vector<4x16x1xf32> to vector<4x16x16xf32>
    %49 = arith.mulf %44, %48 : vector<4x16x16xf32>
    "tpu.trace_start"() <{level = 10 : i32, message = "hmn,hnd->hmd"}> : () -> ()
    %cst_12 = arith.constant dense<0.000000e+00> : vector<4x16x8xf32>
    %50 = tpu.matmul %49, %35, %cst_12 {dimension_numbers = #tpu.dot_dimension_numbers<[2], [1], [1], [2], [0, 0, 0, 1, 1, 2], [0], [0]>} : vector<4x16x16xf32>, vector<4x16x8xf32>, vector<4x16x8xf32> -> vector<4x16x8xf32>
    "tpu.trace_stop"() : () -> ()
    %51 = vector.extract_strided_slice %50 {offsets = [0, 0, 0], sizes = [1, 16, 8], strides = [1, 1, 1]} : vector<4x16x8xf32> to vector<1x16x8xf32>
    %52 = vector.shape_cast %51 : vector<1x16x8xf32> to vector<16x8xf32>
    %53 = vector.extract_strided_slice %50 {offsets = [1, 0, 0], sizes = [1, 16, 8], strides = [1, 1, 1]} : vector<4x16x8xf32> to vector<1x16x8xf32>
    %54 = vector.shape_cast %53 : vector<1x16x8xf32> to vector<16x8xf32>
    %55 = vector.extract_strided_slice %50 {offsets = [2, 0, 0], sizes = [1, 16, 8], strides = [1, 1, 1]} : vector<4x16x8xf32> to vector<1x16x8xf32>
    %56 = vector.shape_cast %55 : vector<1x16x8xf32> to vector<16x8xf32>
    %57 = vector.extract_strided_slice %50 {offsets = [3, 0, 0], sizes = [1, 16, 8], strides = [1, 1, 1]} : vector<4x16x8xf32> to vector<1x16x8xf32>
    %58 = vector.shape_cast %57 : vector<1x16x8xf32> to vector<16x8xf32>
    %59 = tpu.concatenate %52, %54, %56, %58 in 1 : vector<16x8xf32>, vector<16x8xf32>, vector<16x8xf32>, vector<16x8xf32> -> vector<16x32xf32>
    %c0_13 = arith.constant 0 : index
    %c0_14 = arith.constant 0 : index
    %60 = vector.load %arg5[%c0_13, %c0_14] : memref<32x32xf32, #tpu.memory_space<vmem>>, vector<32x32xf32>
    %cst_15 = arith.constant dense<0.000000e+00> : vector<16x32xf32>
    %61 = tpu.matmul %59, %60, %cst_15 {dimension_numbers = #tpu.dot_dimension_numbers<[1], [0], [0], [1], [0, 0, 1, 1], [], []>} : vector<16x32xf32>, vector<32x32xf32>, vector<16x32xf32> -> vector<16x32xf32>
    %c0_16 = arith.constant 0 : index
    %c0_17 = arith.constant 0 : index
    %62 = vector.load %arg6[%c0_16, %c0_17] : memref<1x32xf32, #tpu.memory_space<vmem>>, vector<1x32xf32>
    %63 = vector.broadcast %62 : vector<1x32xf32> to vector<16x32xf32>
    %64 = arith.addf %61, %63 : vector<16x32xf32>
    %65 = arith.addf %64, %1 : vector<16x32xf32>
    %cst_18 = arith.constant dense<0.000000e+00> : vector<16xf32>
    %66 = vector.multi_reduction <add>, %65, %cst_18 [1] : vector<16x32xf32> to vector<16xf32>
    %67 = vector.shape_cast %66 : vector<16xf32> to vector<16x1xf32>
    %cst_19 = arith.constant 3.200000e+01 : f32
    %68 = vector.broadcast %cst_19 : f32 to vector<16x1xf32>
    %69 = arith.divf %67, %68 : vector<16x1xf32>
    %70 = vector.broadcast %69 : vector<16x1xf32> to vector<16x32xf32>
    %71 = arith.subf %65, %70 : vector<16x32xf32>
    %72 = arith.mulf %71, %71 : vector<16x32xf32>
    %cst_20 = arith.constant dense<0.000000e+00> : vector<16xf32>
    %73 = vector.multi_reduction <add>, %72, %cst_20 [1] : vector<16x32xf32> to vector<16xf32>
    %74 = vector.shape_cast %73 : vector<16xf32> to vector<16x1xf32>
    %cst_21 = arith.constant 3.200000e+01 : f32
    %75 = vector.broadcast %cst_21 : f32 to vector<16x1xf32>
    %76 = arith.divf %74, %75 : vector<16x1xf32>
    %c0_22 = arith.constant 0 : index
    %c0_23 = arith.constant 0 : index
    %77 = vector.load %arg7[%c0_22, %c0_23] : memref<1x32xf32, #tpu.memory_space<vmem>>, vector<1x32xf32>
    %cst_24 = arith.constant 9.99999996E-13 : f32
    %78 = vector.broadcast %cst_24 : f32 to vector<16x1xf32>
    %79 = arith.addf %76, %78 : vector<16x1xf32>
    %80 = math.rsqrt %79 : vector<16x1xf32>
    %81 = vector.broadcast %80 : vector<16x1xf32> to vector<16x32xf32>
    %82 = arith.mulf %71, %81 : vector<16x32xf32>
    %83 = vector.broadcast %77 : vector<1x32xf32> to vector<16x32xf32>
    %84 = arith.mulf %83, %82 : vector<16x32xf32>
    %c0_25 = arith.constant 0 : index
    %c0_26 = arith.constant 0 : index
    %85 = vector.load %arg8[%c0_25, %c0_26] : memref<1x32xf32, #tpu.memory_space<vmem>>, vector<1x32xf32>
    %86 = vector.broadcast %85 : vector<1x32xf32> to vector<16x32xf32>
    %87 = arith.addf %84, %86 : vector<16x32xf32>
    %88 = vector.shape_cast %87 : vector<16x32xf32> to vector<2x8x32xf32>
    %89 = vector.extract_strided_slice %88 {offsets = [0, 0, 0], sizes = [2, 1, 32], strides = [1, 1, 1]} : vector<2x8x32xf32> to vector<2x1x32xf32>
    %90 = vector.shape_cast %89 : vector<2x1x32xf32> to vector<2x32xf32>
    %91 = vector.extract_strided_slice %88 {offsets = [0, 1, 0], sizes = [2, 1, 32], strides = [1, 1, 1]} : vector<2x8x32xf32> to vector<2x1x32xf32>
    %92 = vector.shape_cast %91 : vector<2x1x32xf32> to vector<2x32xf32>
    %93 = vector.extract_strided_slice %88 {offsets = [0, 2, 0], sizes = [2, 1, 32], strides = [1, 1, 1]} : vector<2x8x32xf32> to vector<2x1x32xf32>
    %94 = vector.shape_cast %93 : vector<2x1x32xf32> to vector<2x32xf32>
    %95 = vector.extract_strided_slice %88 {offsets = [0, 3, 0], sizes = [2, 1, 32], strides = [1, 1, 1]} : vector<2x8x32xf32> to vector<2x1x32xf32>
    %96 = vector.shape_cast %95 : vector<2x1x32xf32> to vector<2x32xf32>
    %97 = vector.extract_strided_slice %88 {offsets = [0, 4, 0], sizes = [2, 1, 32], strides = [1, 1, 1]} : vector<2x8x32xf32> to vector<2x1x32xf32>
    %98 = vector.shape_cast %97 : vector<2x1x32xf32> to vector<2x32xf32>
    %99 = vector.extract_strided_slice %88 {offsets = [0, 5, 0], sizes = [2, 1, 32], strides = [1, 1, 1]} : vector<2x8x32xf32> to vector<2x1x32xf32>
    %100 = vector.shape_cast %99 : vector<2x1x32xf32> to vector<2x32xf32>
    %101 = vector.extract_strided_slice %88 {offsets = [0, 6, 0], sizes = [2, 1, 32], strides = [1, 1, 1]} : vector<2x8x32xf32> to vector<2x1x32xf32>
    %102 = vector.shape_cast %101 : vector<2x1x32xf32> to vector<2x32xf32>
    %103 = vector.extract_strided_slice %88 {offsets = [0, 7, 0], sizes = [2, 1, 32], strides = [1, 1, 1]} : vector<2x8x32xf32> to vector<2x1x32xf32>
    %104 = vector.shape_cast %103 : vector<2x1x32xf32> to vector<2x32xf32>
    %105 = tpu.concatenate %90, %92, %94, %96, %98, %100, %102, %104 in 1 : vector<2x32xf32>, vector<2x32xf32>, vector<2x32xf32>, vector<2x32xf32>, vector<2x32xf32>, vector<2x32xf32>, vector<2x32xf32>, vector<2x32xf32> -> vector<2x256xf32>
    %c0_27 = arith.constant 0 : index
    %c0_28 = arith.constant 0 : index
    %106 = vector.load %arg9[%c0_27, %c0_28] : memref<2x256xf32, #tpu.memory_space<vmem>>, vector<2x256xf32>
    tpu.vector_store %arg9[%c0_27, %c0_28], %105 {strides = array<i32>} : memref<2x256xf32, #tpu.memory_space<vmem>>, vector<2x256xf32>,
    return
  }
  func.func @transform_0(%arg0: i32) -> (i32, i32, i32) {
    %c0_i32 = arith.constant 0 : i32
    %c0_i32_0 = arith.constant 0 : i32
    %c0_i32_1 = arith.constant 0 : i32
    return %arg0, %c0_i32, %c0_i32_0 : i32, i32, i32
  }
  func.func @transform_1(%arg0: i32) -> (i32, i32, i32) {
    %c0_i32 = arith.constant 0 : i32
    %c0_i32_0 = arith.constant 0 : i32
    %c0_i32_1 = arith.constant 0 : i32
    return %arg0, %c0_i32, %c0_i32_0 : i32, i32, i32
  }
  func.func @transform_2(%arg0: i32) -> (i32, i32) {
    %c0_i32 = arith.constant 0 : i32
    %c0_i32_0 = arith.constant 0 : i32
    %c0_i32_1 = arith.constant 0 : i32
    return %c0_i32, %c0_i32_0 : i32, i32
  }
  func.func @transform_3(%arg0: i32) -> (i32, i32) {
    %c0_i32 = arith.constant 0 : i32
    %c0_i32_0 = arith.constant 0 : i32
    %c0_i32_1 = arith.constant 0 : i32
    return %c0_i32, %c0_i32_0 : i32, i32
  }
  func.func @transform_4(%arg0: i32) -> (i32, i32) {
    %c0_i32 = arith.constant 0 : i32
    %c0_i32_0 = arith.constant 0 : i32
    %c0_i32_1 = arith.constant 0 : i32
    return %c0_i32, %c0_i32_0 : i32, i32
  }
  func.func @transform_5(%arg0: i32) -> (i32, i32) {
    %c0_i32 = arith.constant 0 : i32
    %c0_i32_0 = arith.constant 0 : i32
    %c0_i32_1 = arith.constant 0 : i32
    return %c0_i32, %c0_i32_0 : i32, i32
  }
  func.func @transform_6(%arg0: i32) -> (i32, i32) {
    %c0_i32 = arith.constant 0 : i32
    %c0_i32_0 = arith.constant 0 : i32
    %c0_i32_1 = arith.constant 0 : i32
    return %c0_i32, %c0_i32_0 : i32, i32
  }
  func.func @transform_7(%arg0: i32) -> (i32, i32) {
    %c0_i32 = arith.constant 0 : i32
    %c0_i32_0 = arith.constant 0 : i32
    %c0_i32_1 = arith.constant 0 : i32
    return %c0_i32, %c0_i32_0 : i32, i32
  }
  func.func @transform_8(%arg0: i32) -> (i32, i32) {
    %c0_i32 = arith.constant 0 : i32
    %c0_i32_0 = arith.constant 0 : i32
    return %arg0, %c0_i32 : i32, i32
  }
}

</mosaic_0001>

<bundles_post_ra>
// kernel: tpu_custom_call.1
= control target key start
LH: loop header
LB: loop body
LE: loop exit
PB: predicated region body
PF: predicated region fallthrough
CT: control target
= control target key end

     0   :  { %13 = vsyncpa [#allocation3], 0  ;;  %s1938_s0 = inlined_call_operand.hbm [shape: f32[2,8,32], index: 0, kind: input, shape index: {}]   ;;  %s1939_s1 = inlined_call_operand.hbm [shape: f32[1,16,16], index: 1, kind: input, shape index: {}]   ;;  %s1940_s2 = inlined_call_operand.hbm [shape: f32[32,96], index: 2, kind: input, shape index: {}]   ;;  %s1941_s3 = inlined_call_operand.vmem [shape: f32[1,96], index: 3, kind: input, shape index: {}]   ;;  %s1942_s4 = inlined_call_operand.hbm [shape: f32[32,32], index: 4, kind: input, shape index: {}]   ;;  %s1943_s5 = inlined_call_operand.vmem [shape: f32[1,32], index: 5, kind: input, shape index: {}]   ;;  %s1944_s6 = inlined_call_operand.vmem [shape: f32[1,32], index: 6, kind: input, shape index: {}]   ;;  %s1945_s7 = inlined_call_operand.vmem [shape: f32[1,32], index: 7, kind: input, shape index: {}]   ;;  %s1946_s8 = inlined_call_operand.hbm [shape: f32[2,256], index: 8, kind: output, shape index: {}]  }
   0x1   :  { %14 = vsyncpa [#allocation6], 0 }
   0x2   :  { %15 = vsyncpa [#allocation9], 0 }
   0x3   :  { %16 = vsyncpa [#allocation4], 0  ;;  %s1654_s27 = smov [#allocation5]   ;;  %s1655_s29 = smov [#allocation2]  }
   0x4   :  { %s34_s28 = sshll.u32 %s1654_s27, 4  ;;  %s22_s30 = sshll.u32 %s1655_s29, 4  ;;  %s35_s28 = int_to_ptr.vmem [resolvable:$true] %s34_s28  ;;  %s1714_s30 = int_to_ptr.vmem [resolvable:$true] %s22_s30 }
   0x5   :  { %s1536_s11 = scalar_lea.hbm %s1939_s1, 256 }
   0x6   :  { %p1537_p0 = scmp.ne.s32.totalorder %s1939_s1, %s1536_s11  ;;  %p1540_p1 = scmp.lt.u32.totalorder %s1536_s11, %s1939_s1 }
   0x8   :  { %p1542_p2 = pnand %p1540_p1, %p1537_p0 }
   0xa   :  { %1545 = shalt.err (!%p1542_p2)
}
   0xb   :  { %s1546_s16 = scalar_lea.vmem %s35_s28, 256  ;;  %p1551_p4 = scmp.lt.s32.totalorder %s35_s28, %s35_s28 }
   0xc   :  { %p1547_p3 = scmp.ne.s32.totalorder %s35_s28, %s1546_s16  ;;  %p1552_p5 = scmp.lt.s32.totalorder %s1546_s16, %s1546_s16 }
   0xe   :  { %p1553_p6 = por %p1552_p5, %p1551_p4 }
  0x10   :  { %p1554_p7 = pnand %p1553_p6, %p1547_p3 }
  0x12   :  { %1557 = shalt.err (!%p1554_p7)
}
  0x13   :  { %s1656_s17 = smov 128   ;;  %s1657_s18 = smov 8  }
  0x14   :  { %40 = dma.hbm_to_vmem [thread:$0]  %s1939_s1, 256, %s35_s28, [#allocation6], %s1656_s17, %s1656_s17, %s1657_s18  }
  0x15   :  { %s1558_s23 = scalar_lea.hbm %s1938_s0, 256 }
  0x16   :  { %p1559_p8 = scmp.ne.s32.totalorder %s1938_s0, %s1558_s23  ;;  %p1562_p9 = scmp.lt.u32.totalorder %s1558_s23, %s1938_s0 }
  0x18   :  { %p1564_p10 = pnand %p1562_p9, %p1559_p8 }
  0x1a   :  { %1567 = shalt.err (!%p1564_p10)
}
  0x1b   :  { %s1568_s29 = scalar_lea.vmem %s1714_s30, 256  ;;  %p1573_p12 = scmp.lt.s32.totalorder %s1714_s30, %s1714_s30 }
  0x1c   :  { %p1569_p11 = scmp.ne.s32.totalorder %s1714_s30, %s1568_s29  ;;  %p1574_p13 = scmp.lt.s32.totalorder %s1568_s29, %s1568_s29 }
  0x1e   :  { %p1575_p0 = por %p1574_p13, %p1573_p12 }
  0x20   :  { %p1576_p1 = pnand %p1575_p0, %p1569_p11 }
  0x22   :  { %1579 = shalt.err (!%p1576_p1)
}
  0x23   :  { %28 = dma.hbm_to_vmem [thread:$0]  %s1938_s0, 256, %s1714_s30, [#allocation3], %s1656_s17, %s1656_s17, %s1657_s18  }
  0x24   :  { %s1658_s9 = smov [#allocation7]   ;;  %s1659_s11 = smov [#allocation8]  }
  0x25   :  { %s46_s10 = sshll.u32 %s1658_s9, 4  ;;  %s60_s12 = sshll.u32 %s1659_s11, 4  ;;  %s47_s10 = int_to_ptr.vmem [resolvable:$true] %s46_s10  ;;  %s1751_s12 = int_to_ptr.vmem [resolvable:$true] %s60_s12 }
  0x26   :  { %s1580_s15 = scalar_lea.hbm %s1940_s2, 512 }
  0x27   :  { %p1581_p2 = scmp.ne.s32.totalorder %s1940_s2, %s1580_s15  ;;  %p1584_p3 = scmp.lt.u32.totalorder %s1580_s15, %s1940_s2 }
  0x29   :  { %p1586_p4 = pnand %p1584_p3, %p1581_p2 }
  0x2b   :  { %1589 = shalt.err (!%p1586_p4)
}
  0x2c   :  { %s1590_s0 = scalar_lea.vmem %s47_s10, 512  ;;  %p1595_p6 = scmp.lt.s32.totalorder %s47_s10, %s47_s10 }
  0x2d   :  { %p1591_p5 = scmp.ne.s32.totalorder %s47_s10, %s1590_s0  ;;  %p1596_p7 = scmp.lt.s32.totalorder %s1590_s0, %s1590_s0 }
  0x2f   :  { %p1597_p8 = por %p1596_p7, %p1595_p6 }
  0x31   :  { %p1598_p9 = pnand %p1597_p8, %p1591_p5 }
  0x33   :  { %1601 = shalt.err (!%p1598_p9)
}
  0x34   :  { %52 = dma.hbm_to_vmem [thread:$0]  %s1940_s2, 512, %s47_s10, [#allocation6], %s1656_s17, %s1656_s17, %s1657_s18  }
  0x35   :  { %s1602_s25 = scalar_lea.hbm %s1942_s4, 512 }
  0x36   :  { %p1603_p10 = scmp.ne.s32.totalorder %s1942_s4, %s1602_s25  ;;  %p1606_p11 = scmp.lt.u32.totalorder %s1602_s25, %s1942_s4 }
  0x38   :  { %p1608_p12 = pnand %p1606_p11, %p1603_p10 }
  0x3a   :  { %1611 = shalt.err (!%p1608_p12)
}
  0x3b   :  { %s1612_s28 = scalar_lea.vmem %s1751_s12, 512  ;;  %p1617_p0 = scmp.lt.s32.totalorder %s1751_s12, %s1751_s12 }
  0x3c   :  { %p1613_p13 = scmp.ne.s32.totalorder %s1751_s12, %s1612_s28  ;;  %p1618_p1 = scmp.lt.s32.totalorder %s1612_s28, %s1612_s28 }
  0x3e   :  { %p1619_p2 = por %p1618_p1, %p1617_p0 }
  0x40   :  { %p1620_p3 = pnand %p1619_p2, %p1613_p13 }
  0x42   :  { %1623 = shalt.err (!%p1620_p3)
}
  0x43   :  { %66 = dma.hbm_to_vmem [thread:$0]  %s1942_s4, 512, %s1751_s12, [#allocation9], %s1656_s17, %s1656_s17, %s1657_s18  }
  0x44   :  { %1646 = dma.done.wait [#allocation3], 256  }
  0x45   :  { %1647 = vsyncadd [#allocation3], 4294967040 }
  0x46   :  { %1648 = dma.done.wait [#allocation6], 768  }
  0x47   :  { %1649 = vsyncadd [#allocation6], 4294966528 }
  0x48   :  { %1650 = dma.done.wait [#allocation9], 512  }
  0x49   :  { %1651 = vsyncadd [#allocation9], 4294966784  ;;  %vm100_vm0 = vcmask 261120   ;;  %v89_v0 = vld [vmem:[#allocation7] sm:$0xff]  ;;  %v90_v1 = vld [vmem:[#allocation7 + $0x8] sm:$0xff]  ;;  %vm200_vm1 = vcmask 64512  }
  0x4a   :  { %v91_v2 = vld [vmem:[#allocation7 + $0x10] sm:$0xff]  ;;  %v1389_v3 = vpack.c.bf16 %v90_v1, %v89_v0  ;;  %v92_v4 = vld [vmem:[#allocation7 + $0x18] sm:$0xff]  ;;  %v1788_v5 = vld [vmem:[#allocation2] sm:$0xff]  ;;  %s1660_s10 = smov 112   ;;  %s1661_s11 = smov 120   ;;  %vm545_vm3 = vcmask 130048  }
  0x4b   :  { %v1393_v6 = vpack.c.bf16 %v92_v4, %v91_v2  ;;  %1319 = vmatprep.mubr.msk.f32.mxu0 %vm100_vm0, %v1788_v5  ;;  %v1792_v7 = vld [vmem:[#allocation2 + $0x8] sm:$0xff]  ;;  %v1234_v8 = vld [vmem:[%s1941_s3] ss:$0 sm:$0xff]  ;;  %s1662_s12 = smov 104   ;;  %s1663_s13 = smov 96   ;;  %vm1819_vm2 = vmpackc.low %vm200_vm1, %vm200_vm1  ;;  %vm1010_vm4 = vcmask 195584  }
  0x4c   :  { %1390 = vmatprep.subr.bf16.mxu0 %v1389_v3  ;;  %v88_v40 = vld [vmem:[#allocation5 + $0x8] sm:$0xff]  ;;  %v87_v41 = vld [vmem:[#allocation5] sm:$0xff]  ;;  %s1664_s3 = smov 64   ;;  %s1665_s14 = smov 16   ;;  %vm1155_vm5 = vcmask 1041409   ;;  %vm1198_vm6 = vcmask 523264  }
  0x4d   :  { %1392 = vmatpush3.bf16.msra.mxu0 %v1389_v3  ;;  %s1666_s15 = smov 24   ;;  %s1667_s0 = smov 32   ;;  %vm1200_vm7 = vcmask 785408  }
  0x4e   :  { %1394 = vmatprep.subr.bf16.mxu0 %v1393_v6 }
  0x51   :  { %1396 = vmatpush3.bf16.msra.mxu0 %v1393_v6 }
  0x54   :  { %1320 = vmatmul.mubr.msk.f32.vlgmr.msra.gmra.mrb[0].mxu0 %vm100_vm0, %v1792_v7 }
 0x127   :  { %v1321_v9 = vpop.f32.mrb[0].mxu0 }
 0x128   :  { %v179_v10 = vadd.f32 %v1321_v9, %v1234_v8  ;;  %v173_v11 = vpop.f32.mrb[1].mxu0 }
 0x129   :  { %v174_v12 = vadd.f32 %v1234_v8, %v173_v11 }
 0x12a   :  { %190 = vrot.lane.b32.xlu1 %v179_v10, %s1660_s10 }
 0x12b   :  { %184 = vrot.lane.b32.xlu0 %v174_v12, %s1661_s11  ;;  %1326 = vmatprep.mubr.msk.f32.mxu1 %vm200_vm1, %v174_v12  ;;  %v1800_v13 = vpack.i.bf16 %v179_v10, %v174_v12 }
 0x12e   :  { %188 = vrot.lane.b32.xlu1 %v174_v12, %s1660_s10 }
 0x12f   :  { %186 = vrot.lane.b32.xlu0 %v179_v10, %s1661_s11 }
 0x132   :  { %194 = vrot.lane.b32.xlu1 %v179_v10, %s1662_s12 }
 0x133   :  { %192 = vrot.lane.b32.xlu0 %v174_v12, %s1662_s12 }
 0x137   :  { %1461 = vrot.lane.b32.xlu0 %v1800_v13, %s1663_s13 }
 0x19c   :  { %v191_v14 = vpop.permute.xlu1 %190 }
 0x19d   :  { %v185_v15 = vpop.permute.xlu0 %184 }
 0x19e   :  { %1333 = vmatprep.mubr.msk.f32.mxu0 %vm200_vm1, %v185_v15 }
 0x1a0   :  { %v189_v16 = vpop.permute.xlu1 %188 }
 0x1a1   :  { %v1805_v17 = vpack.i.bf16 %v191_v14, %v189_v16  ;;  %v187_v18 = vpop.permute.xlu0 %186 }
 0x1a2   :  { %v1807_v19 = vpack.i.bf16 %v187_v18, %v185_v15 }
 0x1a3   :  { %1471 = vrot.lane.b32.xlu0 %v1805_v17, %s1663_s13 }
 0x1a4   :  { %v195_v20 = vpop.permute.xlu1 %194  ;;  %1466 = vrot.lane.b32.xlu1 %v1807_v19, %s1663_s13 }
 0x1a5   :  { %v193_v21 = vpop.permute.xlu0 %192 }
 0x1a6   :  { %v1813_v22 = vpack.i.bf16 %v195_v20, %v193_v21 }
 0x1a8   :  { %1476 = vrot.lane.b32.xlu1 %v1813_v22, %s1663_s13 }
 0x1a9   :  { %v1462_v23 = vpop.permute.xlu0 %1461 }
 0x1aa   :  { %v1464_v24 = vunpack.i.h.bf16 %v1462_v23  ;;  %v1463_v25 = vunpack.i.l.bf16 %v1462_v23 }
 0x1ac   :  { %v1397_v27 = vpack.c.bf16 %v1464_v24, %v1463_v25 }
 0x1ae   :  { %1399 = vmatprep.subr.msk.bf16.mxu1 %vm1819_vm2, %v1397_v27 }
 0x1af   :  { %1402 = vmatpush3.bf16.xpose.msk.msra.mxu1 %vm1819_vm2, %v1397_v27 }
 0x1b6   :  { %1327 = vmatmul.mubr.msk.f32.vlgmr.msra.gmra.mrb[0].mxu1 %vm200_vm1, %v179_v10 }
 0x1b7   :  { %1340 = vmatprep.mubr.msk.f32.mxu1 %vm200_vm1, %v189_v16 }
 0x215   :  { %v1472_v28 = vpop.permute.xlu0 %1471 }
 0x216   :  { %v1474_v29 = vunpack.i.h.bf16 %v1472_v28  ;;  %v1473_v30 = vunpack.i.l.bf16 %v1472_v28  ;;  %v1467_v31 = vpop.permute.xlu1 %1466 }
 0x217   :  { %v1469_v32 = vunpack.i.h.bf16 %v1467_v31  ;;  %v1468_v33 = vunpack.i.l.bf16 %v1467_v31 }
 0x218   :  { %v1409_v34 = vpack.c.bf16 %v1474_v29, %v1473_v30 }
 0x219   :  { %v1403_v35 = vpack.c.bf16 %v1469_v32, %v1468_v33 }
 0x21a   :  { %v1477_v36 = vpop.permute.xlu1 %1476  ;;  %1411 = vmatprep.subr.msk.bf16.mxu1 %vm1819_vm2, %v1409_v34 }
 0x21b   :  { %v1479_v37 = vunpack.i.h.bf16 %v1477_v36  ;;  %v1478_v38 = vunpack.i.l.bf16 %v1477_v36  ;;  %1405 = vmatprep.subr.msk.bf16.mxu0 %vm1819_vm2, %v1403_v35  ;;  %1414 = vmatpush3.bf16.xpose.msk.msra.mxu1 %vm1819_vm2, %v1409_v34 }
 0x21c   :  { %1408 = vmatpush3.bf16.xpose.msk.msra.mxu0 %vm1819_vm2, %v1403_v35 }
 0x21d   :  { %v1415_v39 = vpack.c.bf16 %v1479_v37, %v1478_v38 }
 0x21f   :  { %1417 = vmatprep.subr.msk.bf16.mxu0 %vm1819_vm2, %v1415_v39 }
 0x222   :  { %1341 = vmatmul.mubr.msk.f32.vlgmr.msra.gmra.mrb[2].mxu1 %vm200_vm1, %v191_v14 }
 0x223   :  { %1334 = vmatmul.mubr.msk.f32.vlgmr.msra.gmra.mrb[2].mxu0 %vm200_vm1, %v187_v18 }
 0x224   :  { %1420 = vmatpush3.bf16.xpose.msk.msra.mxu0 %vm1819_vm2, %v1415_v39  ;;  %1347 = vmatprep.mubr.msk.f32.mxu0 %vm200_vm1, %v193_v21 }
 0x22b   :  { %1348 = vmatmul.mubr.msk.f32.vlgmr.msra.gmra.mrb[4].mxu0 %vm200_vm1, %v195_v20 }
 0x289   :  { %v1328_v42 = vpop.f32.mrb[0].mxu1 }
 0x28a   :  { %v281_v43 = vadd.f32 %v1328_v42, %v88_v40  ;;  %v275_v44 = vpop.f32.mrb[1].mxu1 }
 0x28b   :  { %v276_v45 = vadd.f32 %v275_v44, %v87_v41 }
 0x28c   :  { %v549_v46 = vsel %vm545_vm3, %v281_v43, -inf }
 0x28d   :  { %550 = vmax.xlane.f32.xlu1 %v549_v46  ;;  %v546_v47 = vsel %vm545_vm3, %v276_v45, -inf }
 0x28e   :  { %547 = vmax.xlane.f32.xlu0 %v546_v47 }
 0x2f5   :  { %v1342_v48 = vpop.f32.mrb[2].mxu1 }
 0x2f6   :  { %v1335_v49 = vpop.f32.mrb[2].mxu0  ;;  %v449_v50 = vpop.f32.mrb[3].mxu1  ;;  %v455_v57 = vadd.f32 %v1342_v48, %v88_v40 }
 0x2f7   :  { %v450_v51 = vadd.f32 %v449_v50, %v87_v41  ;;  %v362_v52 = vpop.f32.mrb[3].mxu0  ;;  %v368_v55 = vadd.f32 %v1335_v49, %v88_v40 }
 0x2f8   :  { %v363_v53 = vadd.f32 %v362_v52, %v87_v41  ;;  %v561_v0 = vsel %vm545_vm3, %v455_v57, -inf }
 0x2f9   :  { %v558_v54 = vsel %vm545_vm3, %v450_v51, -inf  ;;  %v555_v59 = vsel %vm545_vm3, %v368_v55, -inf }
 0x2fa   :  { %559 = vmax.xlane.f32.xlu1 %v558_v54  ;;  %v552_v56 = vsel %vm545_vm3, %v363_v53, -inf }
 0x2fb   :  { %553 = vmax.xlane.f32.xlu0 %v552_v56 }
 0x2fe   :  { %v1349_v58 = vpop.f32.mrb[4].mxu0 }
 0x2ff   :  { %v536_v60 = vpop.f32.mrb[5].mxu0  ;;  %556 = vmax.xlane.f32.xlu0 %v555_v59  ;;  %v542_v62 = vadd.f32 %v1349_v58, %v88_v40 }
 0x300   :  { %v1850_v61 = vadd.f32 %v536_v60, %v87_v41 }
 0x301   :  { %v567_v1 = vsel %vm545_vm3, %v542_v62, -inf }
 0x302   :  { %v564_v63 = vsel %vm545_vm3, %v1850_v61, -inf }
 0x303   :  { %565 = vmax.xlane.f32.xlu1 %v564_v63  ;;  %562 = vmax.xlane.f32.xlu0 %v561_v0 }
 0x307   :  { %568 = vmax.xlane.f32.xlu0 %v567_v1 }
 0x314   :  { %1481 = vrot.lane.b32.xlu1 %v1800_v13, %s1664_s3 }
 0x31a   :  { %v551_v2 = vpop.xlane.xlu1 %550 }
 0x31b   :  { %v571_v3 = vsub.f32 %v281_v43, %v551_v2  ;;  %v548_v6 = vpop.xlane.xlu0 %547 }
 0x31c   :  { %v570_v8 = vsub.f32 %v276_v45, %v548_v6 }
 0x31d   :  { %v580_v4 = vmul.f32 1.442695, %v571_v3 }
 0x31e   :  { %v578_v9 = vmul.f32 1.442695, %v570_v8 }
 0x31f   :  { %1500 = vpow2.f32 %v580_v4 }
 0x320   :  { %1502 = vpow2.f32 %v578_v9 }
 0x329   :  { %v1858_v10 = vpop.eup %1500 }
 0x32a   :  { %v597_v11 = vsel %vm545_vm3, %v1858_v10, 0.0  ;;  %v1503_v12 = vpop.eup %1502 }
 0x32b   :  { %598 = vadd.xlane.f32.xlu0 %v597_v11  ;;  %v594_v14 = vsel %vm545_vm3, %v1503_v12, 0.0 }
 0x338   :  { %595 = vadd.xlane.f32.xlu1 %v594_v14 }
 0x387   :  { %v560_v15 = vpop.xlane.xlu1 %559 }
 0x388   :  { %v574_v13 = vsub.f32 %v450_v51, %v560_v15  ;;  %v554_v16 = vpop.xlane.xlu0 %553 }
 0x389   :  { %v572_v18 = vsub.f32 %v363_v53, %v554_v16 }
 0x38a   :  { %v586_v20 = vmul.f32 1.442695, %v574_v13 }
 0x38b   :  { %v582_v21 = vmul.f32 1.442695, %v572_v18 }
 0x38c   :  { %v557_v23 = vpop.xlane.xlu0 %556 }
 0x38d   :  { %1504 = vpow2.f32 %v582_v21  ;;  %v573_v24 = vsub.f32 %v368_v55, %v557_v23 }
 0x38e   :  { %1506 = vpow2.f32 %v586_v20 }
 0x38f   :  { %v584_v25 = vmul.f32 1.442695, %v573_v24 }
 0x390   :  { %v566_v26 = vpop.xlane.xlu1 %565  ;;  %v563_v27 = vpop.xlane.xlu0 %562 }
 0x391   :  { %1508 = vpow2.f32 %v584_v25  ;;  %v575_v28 = vsub.f32 %v455_v57, %v563_v27  ;;  %v576_v47 = vsub.f32 %v1850_v61, %v566_v26  ;;  %v1013_v27 = vld [vmem:[#allocation8] sm:$0xff] }
 0x393   :  { %v588_v29 = vmul.f32 1.442695, %v575_v28  ;;  %v590_v48 = vmul.f32 1.442695, %v576_v47  ;;  %v1014_v28 = vld [vmem:[#allocation8 + $0x8] sm:$0xff] }
 0x394   :  { %v1482_v30 = vpop.permute.xlu1 %1481  ;;  %v569_v31 = vpop.xlane.xlu0 %568 }
 0x395   :  { %v1484_v32 = vunpack.i.h.bf16 %v1482_v30  ;;  %v1483_v33 = vunpack.i.l.bf16 %v1482_v30  ;;  %v577_v34 = vsub.f32 %v542_v62, %v569_v31  ;;  %1510 = vpow2.f32 %v588_v29  ;;  %v1015_v29 = vld [vmem:[#allocation8 + $0x10] sm:$0xff]  ;;  %v1016_v31 = vld [vmem:[#allocation8 + $0x18] sm:$0xff] }
 0x396   :  { %v1437_v30 = vpack.c.bf16 %v1014_v28, %v1013_v27 }
 0x397   :  { %v1505_v35 = vpop.eup %1504  ;;  %v1421_v36 = vpack.c.bf16 %v1484_v32, %v1483_v33  ;;  %v592_v37 = vmul.f32 1.442695, %v577_v34  ;;  %v1441_v32 = vpack.c.bf16 %v1016_v31, %v1015_v29 }
 0x398   :  { %v600_v38 = vsel %vm545_vm3, %v1505_v35, 0.0  ;;  %v1507_v39 = vpop.eup %1506  ;;  %1438 = vmatprep.subr.bf16.mxu0 %v1437_v30 }
 0x399   :  { %1512 = vpow2.f32 %v592_v37  ;;  %1422 = vmatprep.subr.bf16.mxu1 %v1421_v36  ;;  %601 = vadd.xlane.f32.xlu1 %v600_v38  ;;  %v606_v41 = vsel %vm545_vm3, %v1507_v39, 0.0 }
 0x39a   :  { %1424 = vmatpush3.bf16.msra.mxu1 %v1421_v36  ;;  %1514 = vpow2.f32 %v590_v48  ;;  %1440 = vmatpush3.bf16.msra.mxu0 %v1437_v30 }
 0x39b   :  { %v1509_v40 = vpop.eup %1508  ;;  %1442 = vmatprep.subr.bf16.mxu0 %v1441_v32 }
 0x39c   :  { %v603_v42 = vsel %vm545_vm3, %v1509_v40, 0.0 }
 0x39d   :  { %607 = vadd.xlane.f32.xlu1 %v606_v41  ;;  %604 = vadd.xlane.f32.xlu0 %v603_v42 }
 0x39e   :  { %1444 = vmatpush3.bf16.msra.mxu0 %v1441_v32 }
 0x39f   :  { %v1511_v43 = vpop.eup %1510 }
 0x3a0   :  { %v609_v44 = vsel %vm545_vm3, %v1511_v43, 0.0 }
 0x3a1   :  { %610 = vadd.xlane.f32.xlu0 %v609_v44 }
 0x3a3   :  { %v1867_v45 = vpop.eup %1512 }
 0x3a4   :  { %v615_v46 = vsel %vm545_vm3, %v1867_v45, 0.0  ;;  %v1515_v51 = vpop.eup %1514 }
 0x3a5   :  { %616 = vadd.xlane.f32.xlu0 %v615_v46  ;;  %v612_v54 = vsel %vm545_vm3, %v1515_v51, 0.0 }
 0x3ae   :  { %1491 = vrot.lane.b32.xlu1 %v1805_v17, %s1664_s3 }
 0x3b8   :  { %v599_v49 = vpop.xlane.xlu0 %598 }
 0x3b9   :  { %1516 = vrcp.f32 %v599_v49 }
 0x3bb   :  { %1486 = vrot.lane.b32.xlu0 %v1807_v19, %s1664_s3 }
 0x3c3   :  { %v1517_v52 = vpop.eup %1516 }
 0x3c4   :  { %v627_v56 = vmul.f32 %v1517_v52, %v1858_v10 }
 0x3c5   :  { %v596_v50 = vpop.xlane.xlu1 %595 }
 0x3c6   :  { %1518 = vrcp.f32 %v596_v50 }
 0x3d0   :  { %v1519_v53 = vpop.eup %1518 }
 0x3d1   :  { %v626_v55 = vmul.f32 %v1519_v53, %v1503_v12 }
 0x3d2   :  { %613 = vadd.xlane.f32.xlu1 %v612_v54 }
 0x3d3   :  { %1354 = vmatprep.mubr.msk.f32.mxu1 %vm545_vm3, %v626_v55 }
 0x3d4   :  { %1355 = vmatmul.mubr.msk.f32.vlgmr.msra.gmra.mrb[4].mxu1 %vm545_vm3, %v627_v56 }
 0x3e3   :  { %1496 = vrot.lane.b32.xlu1 %v1813_v22, %s1664_s3 }
 0x426   :  { %v602_v17 = vpop.xlane.xlu1 %601 }
 0x427   :  { %1520 = vrcp.f32 %v602_v17 }
 0x42a   :  { %v605_v19 = vpop.xlane.xlu0 %604  ;;  %v608_v57 = vpop.xlane.xlu1 %607 }
 0x42b   :  { %1522 = vrcp.f32 %v605_v19 }
 0x42c   :  { %1524 = vrcp.f32 %v608_v57 }
 0x42e   :  { %v611_v58 = vpop.xlane.xlu0 %610  ;;  %v1492_v62 = vpop.permute.xlu1 %1491 }
 0x42f   :  { %1526 = vrcp.f32 %v611_v58  ;;  %v1494_v0 = vunpack.i.h.bf16 %v1492_v62  ;;  %v1493_v1 = vunpack.i.l.bf16 %v1492_v62 }
 0x431   :  { %v1521_v59 = vpop.eup %1520  ;;  %v1429_v8 = vpack.c.bf16 %v1494_v0, %v1493_v1 }
 0x432   :  { %v628_v60 = vmul.f32 %v1521_v59, %v1505_v35  ;;  %v617_v61 = vpop.xlane.xlu0 %616 }
 0x433   :  { %1528 = vrcp.f32 %v617_v61 }
 0x434   :  { %1361 = vmatprep.mubr.msk.f32.mxu1 %vm545_vm3, %v628_v60 }
 0x435   :  { %v1523_v4 = vpop.eup %1522 }
 0x436   :  { %v1487_v63 = vpop.permute.xlu0 %1486  ;;  %v1525_v6 = vpop.eup %1524  ;;  %v629_v9 = vmul.f32 %v1523_v4, %v1509_v40 }
 0x437   :  { %v1489_v2 = vunpack.i.h.bf16 %v1487_v63  ;;  %v1488_v3 = vunpack.i.l.bf16 %v1487_v63  ;;  %v630_v11 = vmul.f32 %v1525_v6, %v1507_v39 }
 0x439   :  { %v1425_v22 = vpack.c.bf16 %v1489_v2, %v1488_v3  ;;  %v1527_v10 = vpop.eup %1526 }
 0x43a   :  { %v631_v12 = vmul.f32 %v1527_v10, %v1511_v43  ;;  %v1264_v10 = vld [vmem:[%s1944_s6] ss:$0 sm:$0xff]  ;;  %s1668_s6 = smov [#allocation10]  }
 0x43b   :  { %1426 = vmatprep.subr.bf16.mxu1 %v1425_v22 }
 0x43c   :  { %1428 = vmatpush3.bf16.msra.mxu1 %v1425_v22 }
 0x43d   :  { %1430 = vmatprep.subr.bf16.mxu1 %v1429_v8  ;;  %v1529_v20 = vpop.eup %1528 }
 0x43e   :  { %v633_v24 = vmul.f32 %v1529_v20, %v1867_v45 }
 0x43f   :  { %1362 = vmatmul.mubr.msk.f32.vlgmr.msra.gmra.mrb[6].mxu1 %vm545_vm3, %v629_v9 }
 0x440   :  { %1432 = vmatpush3.bf16.msra.mxu1 %v1429_v8  ;;  %1368 = vmatprep.mubr.msk.f32.mxu1 %vm545_vm3, %v630_v11 }
 0x443   :  { %1369 = vmatmul.mubr.msk.f32.vlgmr.msra.gmra.mrb[8].mxu1 %vm545_vm3, %v631_v12  ;;  %v1265_v12 = vld [vmem:[%s1945_s7] ss:$0 sm:$0xff]  ;;  %s1223_s7 = sshll.u32 %s1668_s6, 4  ;;  %s1224_s7 = int_to_ptr.vmem [resolvable:$true] %s1223_s7 }
 0x444   :  { %s1624_s30 = scalar_lea.vmem %s1224_s7, 64  ;;  %p1629_p5 = scmp.lt.s32.totalorder %s1224_s7, %s1224_s7 }
 0x445   :  { %p1625_p4 = scmp.ne.s32.totalorder %s1224_s7, %s1624_s30  ;;  %p1630_p6 = scmp.lt.s32.totalorder %s1624_s30, %s1624_s30 }
 0x447   :  { %p1631_p7 = por %p1630_p6, %p1629_p5 }
 0x449   :  { %p1632_p8 = pnand %p1631_p7, %p1625_p4 }
 0x45f   :  { %v614_v14 = vpop.xlane.xlu1 %613 }
 0x460   :  { %1530 = vrcp.f32 %v614_v14 }
 0x463   :  { %v1497_v15 = vpop.permute.xlu1 %1496 }
 0x464   :  { %v1499_v13 = vunpack.i.h.bf16 %v1497_v15  ;;  %v1498_v16 = vunpack.i.l.bf16 %v1497_v15 }
 0x466   :  { %v1433_v18 = vpack.c.bf16 %v1499_v13, %v1498_v16 }
 0x468   :  { %1434 = vmatprep.subr.bf16.mxu1 %v1433_v18 }
 0x469   :  { %1436 = vmatpush3.bf16.msra.mxu1 %v1433_v18 }
 0x46a   :  { %v1531_v21 = vpop.eup %1530 }
 0x46b   :  { %v632_v23 = vmul.f32 %v1531_v21, %v1515_v51  ;;  %v1261_v51 = vld [vmem:[%s1943_s5] ss:$0 sm:$0xff] }
 0x46d   :  { %1375 = vmatprep.mubr.msk.f32.mxu1 %vm545_vm3, %v632_v23 }
 0x46e   :  { %1376 = vmatmul.mubr.msk.f32.vlgmr.msra.gmra.mrb[10].mxu1 %vm545_vm3, %v633_v24 }
 0x4a7   :  { %v1356_v25 = vpop.f32.mrb[4].mxu1 }
 0x4a8   :  { %v712_v26 = vpop.f32.mrb[5].mxu1 }
 0x512   :  { %v1363_v33 = vpop.f32.mrb[6].mxu1 }
 0x513   :  { %986 = vrot.lane.b32.xlu1 %v1363_v33, %s1657_s18  ;;  %v799_v34 = vpop.f32.mrb[7].mxu1 }
 0x514   :  { %984 = vrot.lane.b32.xlu0 %v799_v34, %s1657_s18 }
 0x516   :  { %v1370_v35 = vpop.f32.mrb[8].mxu1 }
 0x517   :  { %994 = vrot.lane.b32.xlu1 %v1370_v35, %s1665_s14  ;;  %v886_v36 = vpop.f32.mrb[9].mxu1 }
 0x518   :  { %992 = vrot.lane.b32.xlu0 %v886_v36, %s1665_s14 }
 0x541   :  { %v1377_v37 = vpop.f32.mrb[10].mxu1 }
 0x542   :  { %1002 = vrot.lane.b32.xlu1 %v1377_v37, %s1666_s15  ;;  %v973_v38 = vpop.f32.mrb[11].mxu1 }
 0x543   :  { %1000 = vrot.lane.b32.xlu0 %v973_v38, %s1666_s15 }
 0x585   :  { %v987_v39 = vpop.permute.xlu1 %986 }
 0x586   :  { %v985_v40 = vpop.permute.xlu0 %984  ;;  %v1007_v45 = vsel %vm200_vm1, %v1356_v25, %v987_v39 }
 0x587   :  { %v1006_v43 = vsel %vm200_vm1, %v712_v26, %v985_v40 }
 0x589   :  { %v995_v41 = vpop.permute.xlu1 %994 }
 0x58a   :  { %v993_v42 = vpop.permute.xlu0 %992  ;;  %v1009_v48 = vsel %vm545_vm3, %v1007_v45, %v995_v41 }
 0x58b   :  { %v1008_v46 = vsel %vm545_vm3, %v1006_v43, %v993_v42 }
 0x5b4   :  { %v1003_v44 = vpop.permute.xlu1 %1002 }
 0x5b5   :  { %v1001_v47 = vpop.permute.xlu0 %1000  ;;  %v1012_v50 = vsel %vm1010_vm4, %v1009_v48, %v1003_v44 }
 0x5b6   :  { %v1011_v49 = vsel %vm1010_vm4, %v1008_v46, %v1001_v47 }
 0x5b7   :  { %1386 = vmatprep.mubr.msk.f32.mxu0 %vm100_vm0, %v1011_v49 }
 0x5b8   :  { %1387 = vmatmul.mubr.msk.f32.vlgmr.msra.gmra.mrb[6].mxu0 %vm100_vm0, %v1012_v50 }
 0x68b   :  { %v1388_v52 = vpop.f32.mrb[6].mxu0 }
 0x68c   :  { %v1102_v53 = vadd.f32 %v1388_v52, %v1261_v51  ;;  %v1096_v54 = vpop.f32.mrb[7].mxu0 }
 0x68d   :  { %v1097_v55 = vadd.f32 %v1261_v51, %v1096_v54 }
 0x68e   :  { %v1106_v56 = vadd.f32 %v1102_v53, %v1792_v7 }
 0x68f   :  { %v1105_v17 = vadd.f32 %v1097_v55, %v1788_v5 }
 0x690   :  { %v1110_v19 = vsel %vm100_vm0, %v1106_v56, 0.0 }
 0x691   :  { %1111 = vadd.xlane.f32.xlu1 %v1110_v19  ;;  %v1107_v57 = vsel %vm100_vm0, %v1105_v17, 0.0 }
 0x692   :  { %1108 = vadd.xlane.f32.xlu0 %v1107_v57 }
 0x71e   :  { %v1112_v58 = vpop.xlane.xlu1 %1111 }
 0x71f   :  { %v1115_v59 = vmul.f32 0.03125, %v1112_v58  ;;  %v1109_v60 = vpop.xlane.xlu0 %1108 }
 0x720   :  { %v1114_v61 = vmul.f32 0.03125, %v1109_v60 }
 0x721   :  { %v1117_v62 = vsub.f32 %v1106_v56, %v1115_v59 }
 0x722   :  { %v1116_v63 = vsub.f32 %v1105_v17, %v1114_v61 }
 0x723   :  { %v1119_v2 = vmul.f32 %v1117_v62, %v1117_v62 }
 0x724   :  { %v1118_v0 = vmul.f32 %v1116_v63, %v1116_v63 }
 0x725   :  { %v1123_v7 = vsel %vm100_vm0, %v1119_v2, 0.0 }
 0x726   :  { %v1120_v1 = vsel %vm100_vm0, %v1118_v0, 0.0 }
 0x727   :  { %1121 = vadd.xlane.f32.xlu0 %v1120_v1 }
 0x72b   :  { %1124 = vadd.xlane.f32.xlu0 %v1123_v7 }
 0x7b4   :  { %v1122_v5 = vpop.xlane.xlu0 %1121 }
 0x7b5   :  { %v1126_v3 = vmul.f32 0.03125, %v1122_v5 }
 0x7b7   :  { %v1129_v22 = vadd.f32 1e-12, %v1126_v3 }
 0x7b8   :  { %v1125_v4 = vpop.xlane.xlu0 %1124 }
 0x7b9   :  { %1532 = vrsqrt.f32 %v1129_v22  ;;  %v1127_v6 = vmul.f32 0.03125, %v1125_v4 }
 0x7bb   :  { %v1130_v8 = vadd.f32 1e-12, %v1127_v6 }
 0x7bd   :  { %1534 = vrsqrt.f32 %v1130_v8 }
 0x7c3   :  { %v1533_v9 = vpop.eup %1532 }
 0x7c4   :  { %v1133_v11 = vmul.f32 %v1533_v9, %v1116_v63 }
 0x7c6   :  { %v1141_v14 = vmul.f32 %v1264_v10, %v1133_v11 }
 0x7c7   :  { %v1535_v15 = vpop.eup %1534 }
 0x7c8   :  { %v1150_v13 = vadd.f32 %v1265_v12, %v1141_v14  ;;  %v1134_v16 = vmul.f32 %v1535_v15, %v1117_v62 }
 0x7ca   :  { %v1142_v18 = vmul.f32 %v1264_v10, %v1134_v16  ;;  %v1158_v21 = vrot.slane %v1150_v13, 1  ;;  %v1179_v24 = vrot.slane %v1150_v13, 5  ;;  %v1175_v28 = vrot.slane %v1150_v13, 4 }
 0x7cb   :  { %v1163_v31 = vrot.slane %v1150_v13, 2  ;;  %v1169_v36 = vrot.slane %v1150_v13, 3  ;;  %v1185_v39 = vrot.slane %v1150_v13, 6  ;;  %v1191_v42 = vrot.slane %v1150_v13, 7 }
 0x7cc   :  { %v1151_v20 = vadd.f32 %v1265_v12, %v1142_v18 }
 0x7ce   :  { %v1159_v23 = vsel %vm1155_vm5, %v1151_v20, %v1158_v21  ;;  %v1180_v25 = vrot.slane %v1151_v20, 4  ;;  %v1164_v26 = vrot.slane %v1151_v20, 1  ;;  %v1154_v27 = vrot.slane %v1151_v20, 7 }
 0x7cf   :  { %1160 = vrot.lane.b32.xlu1 %v1159_v23, %s1667_s0  ;;  %v1176_v29 = vrot.slane %v1151_v20, 3  ;;  %v1170_v32 = vrot.slane %v1151_v20, 2  ;;  %v1186_v37 = vrot.slane %v1151_v20, 5  ;;  %v1192_v41 = vrot.slane %v1151_v20, 6 }
 0x7d0   :  { %v1181_v30 = vsel %vm1155_vm5, %v1180_v25, %v1179_v24  ;;  %v1156_v33 = vsel %vm1155_vm5, %v1154_v27, %v1150_v13  ;;  %v1165_v35 = vsel %vm1155_vm5, %v1164_v26, %v1163_v31 }
 0x7d1   :  { %1182 = vrot.lane.b32.xlu0 %v1181_v30, %s1667_s0  ;;  %v1177_v34 = vsel %vm1155_vm5, %v1176_v29, %v1175_v28  ;;  %v1171_v38 = vsel %vm1155_vm5, %v1170_v32, %v1169_v36  ;;  %v1187_v40 = vsel %vm1155_vm5, %v1186_v37, %v1185_v39  ;;  %v1193_v43 = vsel %vm1155_vm5, %v1192_v41, %v1191_v42 }
 0x7d3   :  { %1166 = vrot.lane.b32.xlu1 %v1165_v35, %s1664_s3 }
 0x7d5   :  { %1172 = vrot.lane.b32.xlu0 %v1171_v38, %s1663_s13 }
 0x7d7   :  { %1188 = vrot.lane.b32.xlu1 %v1187_v40, %s1664_s3 }
 0x7db   :  { %1194 = vrot.lane.b32.xlu1 %v1193_v43, %s1663_s13 }
 0x841   :  { %v1161_v44 = vpop.permute.xlu1 %1160 }
 0x842   :  { %v1197_v48 = vsel %vm100_vm0, %v1156_v33, %v1161_v44 }
 0x843   :  { %v1183_v45 = vpop.permute.xlu0 %1182 }
 0x844   :  { %v1202_v51 = vsel %vm100_vm0, %v1177_v34, %v1183_v45 }
 0x845   :  { %v1167_v46 = vpop.permute.xlu1 %1166 }
 0x846   :  { %v1199_v49 = vsel %vm1198_vm6, %v1197_v48, %v1167_v46 }
 0x847   :  { %v1173_v50 = vpop.permute.xlu0 %1172 }
 0x848   :  { %v1201_v54 = vsel %vm1200_vm7, %v1199_v49, %v1173_v50 }
 0x849   :  { %v1189_v47 = vpop.permute.xlu1 %1188 }
 0x84a   :  { %v1203_v52 = vsel %vm1198_vm6, %v1202_v51, %v1189_v47 }
 0x84d   :  { %v1195_v53 = vpop.permute.xlu1 %1194 }
 0x84e   :  { %v1204_v55 = vsel %vm1200_vm7, %v1203_v52, %v1195_v53 }
 0x84f   :  { %v1207_v56 = vcombine.low %v1201_v54, %v1204_v55 }
 0x851   :  { %1266 = vst.sshfl [vmem:[#allocation10] sm:$0x33 pattern:$0x76325410] %v1207_v56 }
 0x852   :  { %1635 = shalt.err (!%p1632_p8)
}
 0x853   :  { %s1636_s24 = scalar_lea.hbm %s1946_s8, 64 }
 0x854   :  { %p1637_p9 = scmp.ne.s32.totalorder %s1946_s8, %s1636_s24  ;;  %p1640_p10 = scmp.lt.u32.totalorder %s1636_s24, %s1946_s8 }
 0x856   :  { %p1642_p11 = pnand %p1640_p10, %p1637_p9 }
 0x858   :  { %1645 = shalt.err (!%p1642_p11)
}
 0x859   :  { %1226 = dma.vmem_to_hbm [thread:$0]  %s1224_s7, 64, %s1946_s8, [#allocation4]  }
 0x85a   :  { %1652 = dma.done.wait [#allocation4], 64  }
 0x85b   :  { %1653 = vsyncadd [#allocation4], 4294967232 }
 0x85c   :  { %1230 = vsyncpa [#allocation3], 1 }
 0x85d   :  { %1231 = vsyncpa [#allocation6], 1 }
 0x85e   :  { %1232 = vsyncpa [#allocation9], 1 }
 0x85f   :  { %1233 = vsyncpa [#allocation4], 1 }

</bundles_post_ra>
